<compile_context>
chip_gen: v6e
topology: v6e:2x2x1
jax: 0.10.0
libtpu: 0.0.40
codegen_flags: <defaults>
</compile_context>

<pallas_src>
import functools
import math

import jax
import jax.numpy as jnp
import numpy as np
from jax.experimental import pallas as pl
from jax.experimental.pallas import tpu as pltpu


# ------------------------------ Pallas kernel -------------------------------

def _coordconv_kernel(x_ref, w_ref, o_ref, *, H, W, D, C_in_pad,
                      lo, step_x, step_y, mxu_dtype):
    """Fused CoordConv forward over one lane chunk (a whole number of images).

    x_ref : (D, chunk)            raw input channels, image-major flattened lanes
    w_ref : (C_out, 10*C_in_pad)  conv weights (tap-major, channel-minor, padded
                                  to 8-row tap blocks) + bias block
    o_ref : (C_out, chunk)        output, lane-dense
    """
    chunk = x_ref.shape[-1]
    HW = H * W
    f32 = jnp.float32

    # ---- per-pixel row/col index within its image (chunk is image-aligned) ---
    col = jax.lax.broadcasted_iota(jnp.int32, (1, chunk), 1)
    if (W & (W - 1)) == 0 and (H & (H - 1)) == 0:
        w_idx = col & (W - 1)
        h_idx = (col >> int(math.log2(W))) & (H - 1)
    else:
        pix = col % HW
        w_idx = pix % W
        h_idx = pix // W

    # ---- coordinate channels (== torch.linspace over W / H) ------------------
    x_coord = lo + w_idx.astype(f32) * step_x
    y_coord = lo + h_idx.astype(f32) * step_y

    # ---- channel matrix [x | x_plane | y_plane | 0-pad], 8-sublane aligned ----
    parts = [x_ref[...].astype(f32), x_coord, y_coord]
    if C_in_pad > D + 2:
        parts.append(jnp.zeros((C_in_pad - (D + 2), chunk), f32))
    X = jnp.concatenate(parts, axis=0)                      # (C_in_pad, chunk)

    # ---- boundary masks: computed once, reused across taps -------------------
    vw_m = w_idx >= 1            # left neighbour exists
    vw_p = w_idx < (W - 1)       # right neighbour exists
    vh_m = h_idx >= 1            # upper neighbour exists
    vh_p = h_idx < (H - 1)       # lower neighbour exists
    mask_tbl = {
        (-1, -1): vh_m & vw_m, (-1, 0): vh_m, (-1, 1): vh_m & vw_p,
        (0, -1): vw_m,         (0, 0): None,  (0, 1): vw_p,
        (1, -1): vh_p & vw_m,  (1, 0): vh_p,  (1, 1): vh_p & vw_p,
    }

    # ---- stacked im2col patch, built in registers (no VMEM scratch) ----------
    taps = []
    for kh in range(3):
        dh = kh - 1
        for kw in range(3):
            dw = kw - 1
            offset = dh * W + dw                   # source lane = dest lane + offset
            if offset == 0:
                taps.append(X)                     # center tap: no shift, no padding
            else:
                shifted = jnp.roll(X, -offset, axis=1)            # lane rotation (XLU)
                taps.append(jnp.where(mask_tbl[(dh, dw)], shifted, 0.0))
    # bias block: a ones row (+ zero rows to keep the block 8-aligned)
    bias_parts = [jnp.ones((1, chunk), f32)]
    if C_in_pad > 1:
        bias_parts.append(jnp.zeros((C_in_pad - 1, chunk), f32))
    taps.append(jnp.concatenate(bias_parts, axis=0))
    patch = jnp.concatenate(taps, axis=0)                   # (10*C_in_pad, chunk)

    # ---- single fused MXU matmul (bias folded in), lane-dense store ----------
    acc = jnp.dot(w_ref[...], patch.astype(mxu_dtype),
                  preferred_element_type=jnp.float32)
    o_ref[...] = acc.astype(o_ref.dtype)


# ------------------------------ wrapper --------------------------------------

def _default_num_steps(N):
    """>=2 parallel steps for v7x's two TensorCores, 1 wide step otherwise."""
    try:
        kind = jax.devices()[0].device_kind.lower()
    except Exception:
        kind = ""
    return 2 if ("v7" in kind and N >= 2) else 1


def coord_conv_forward(x, weight, bias, coord_conv_stride, coord_scale,
                       *, use_bf16_mxu=False, num_parallel_steps=None):
    """Reproduces CoordConv.forward with conv_layer = Conv2d(D+2, C_out, 3, padding=1).

    x:      (N, D, H, W)  float32 (NCHW, as in PyTorch)
    weight: (C_out, D+2, 3, 3)
    bias:   (C_out,)
    """
    N, D, H, W = x.shape
    C_out, C_in = weight.shape[0], weight.shape[1]
    assert C_in == D + 2
    HW = H * W
    C_in_pad = ((C_in + 7) // 8) * 8
    K_pad = 10 * C_in_pad                       # 9 tap blocks + 1 bias block

    lo = float(-coord_scale + coord_conv_stride / 2.0)
    hi = float(coord_scale - coord_conv_stride / 2.0)
    step_x = (hi - lo) / max(W - 1, 1)
    step_y = (hi - lo) / max(H - 1, 1)

    # Grid = image-aligned lane chunks.  1 wide step on single-TC chips (v5e/v6e),
    # >=2 parallel steps on v7x.  Chunks must be image-aligned (so the in-chunk
    # lane rolls + masks stay correct) and lane-dense (multiple of 128).
    req = num_parallel_steps if num_parallel_steps is not None else _default_num_steps(N)
    num_steps = math.gcd(N, max(1, int(req)))
    chunk = (N // num_steps) * HW
    if num_steps > 1 and chunk % 128 != 0:
        num_steps, chunk = 1, N * HW

    # (N, D, H, W) -> (D, N*H*W): lane axis is image-major flattened spatial.
    x_flat = jnp.transpose(x, (1, 0, 2, 3)).reshape(D, N * HW)

    # (C_out, C_in, 3, 3) -> (C_out, 9*C_in_pad) with column order
    # (kh*3+kw)*C_in_pad + ci (zero columns for padded channels), then a bias
    # block whose first column holds the bias (matching the in-kernel ones row).
    mxu_dtype = jnp.bfloat16 if use_bf16_mxu else jnp.float32
    w_tap = jnp.transpose(weight, (0, 2, 3, 1))                 # (C_out, 3, 3, C_in)
    w_tap = jnp.pad(w_tap, ((0, 0), (0, 0), (0, 0), (0, C_in_pad - C_in)))
    w_tap = w_tap.reshape(C_out, 9 * C_in_pad)
    w_bias = jnp.pad(bias.reshape(C_out, 1), ((0, 0), (0, C_in_pad - 1)))
    w_full = jnp.concatenate([w_tap, w_bias], axis=1).astype(mxu_dtype)

    kernel = functools.partial(_coordconv_kernel, H=H, W=W, D=D,
                               C_in_pad=C_in_pad, lo=lo,
                               step_x=step_x, step_y=step_y,
                               mxu_dtype=mxu_dtype)
    out_flat = pl.pallas_call(
        kernel,
        out_shape=jax.ShapeDtypeStruct((C_out, N * HW), x.dtype),
        grid_spec=pltpu.PrefetchScalarGridSpec(
            num_scalar_prefetch=0,
            grid=(num_steps,),
            in_specs=[
                pl.BlockSpec((D, chunk), lambda i: (0, i)),
                pl.BlockSpec((C_out, K_pad), lambda i: (0, 0)),
            ],
            out_specs=pl.BlockSpec((C_out, chunk), lambda i: (0, i)),
        ),
        compiler_params=pltpu.CompilerParams(
            dimension_semantics=("parallel",)),
    )(x_flat, w_full)

    # (C_out, N*H*W) -> NCHW.
    return jnp.transpose(out_flat.reshape(C_out, N, H, W), (1, 0, 2, 3))


# ------------------------------ reference ------------------------------------

def coord_conv_reference(x, weight, bias, coord_conv_stride, coord_scale):
    N, D, H, W = x.shape
    stride = coord_conv_stride
    lo = -1.0 * coord_scale + stride / 2.0
    hi = 1.0 * coord_scale - stride / 2.0
    x_line = jnp.linspace(lo, hi, W, dtype=x.dtype)
    y_line = jnp.linspace(lo, hi, H, dtype=x.dtype)
    x_plane = jnp.broadcast_to(x_line.reshape(1, 1, 1, W), (N, 1, H, W))
    y_plane = jnp.broadcast_to(y_line.reshape(1, 1, H, 1), (N, 1, H, W))
    x_cat = jnp.concatenate([x, x_plane, y_plane], axis=1)
    out = jax.lax.conv_general_dilated(
        x_cat, weight, window_strides=(1, 1), padding="SAME",
        dimension_numbers=("NCHW", "OIHW", "NCHW"))
    return out + bias.reshape(1, -1, 1, 1)


# ------------------------------ main ------------------------------------------

if __name__ == "__main__":
    key = jax.random.PRNGKey(0)
    k_x, k_w, k_b = jax.random.split(key, 3)

    # Small shapes consistent with the module's forward pass.
    N, D, H, W = 2, 4, 16, 16
    C_out = 8
    coord_conv_stride = 0.05
    coord_scale = 0.1

    x = jax.random.normal(k_x, (N, D, H, W), dtype=jnp.float32)
    # Synthetic parameters for conv_layer = Conv2d(D+2, C_out, 3, padding=1)
    weight = 0.1 * jax.random.normal(k_w, (C_out, D + 2, 3, 3), dtype=jnp.float32)
    bias = 0.1 * jax.random.normal(k_b, (C_out,), dtype=jnp.float32)

    fwd = jax.jit(functools.partial(
        coord_conv_forward,
        coord_conv_stride=coord_conv_stride, coord_scale=coord_scale))
    out = fwd(x, weight, bias)
    jax.block_until_ready(out)

    ref = coord_conv_reference(x, weight, bias, coord_conv_stride, coord_scale)
    np.testing.assert_allclose(np.asarray(out), np.asarray(ref),
                               rtol=1e-4, atol=1e-4)

    print("KERNEL_OK")
</pallas_src>

<mosaic_0001>
module attributes {stable_mosaic.version = 11 : i64} {
  func.func @_coordconv_kernel(%arg0: i32, %arg1: memref<4x512xf32, #tpu.memory_space<vmem>>, %arg2: memref<8x80xf32, #tpu.memory_space<vmem>>, %arg3: memref<8x512xf32, #tpu.memory_space<vmem>>) attributes {dimension_semantics = [#tpu.dimension_semantics<parallel>], iteration_bounds = array<i64: 1>, scalar_prefetch = 0 : i64, scratch_operands = 0 : i64, tpu.core_type = #tpu.core_type<tc>, window_params = [{transform_indices = @transform_0, window_bounds = array<i64: 4, 512>}, {pipeline_mode = #tpu.pipeline_mode<synchronous>, transform_indices = @transform_1, window_bounds = array<i64: 8, 80>}, {transform_indices = @transform_2, window_bounds = array<i64: 8, 512>}]} {
    %0 = tpu.iota {dimensions = array<i32: 1>} : vector<1x512xi32>
    %c15_i32 = arith.constant 15 : i32
    %1 = vector.broadcast %c15_i32 : i32 to vector<1x512xi32>
    %2 = arith.andi %0, %1 : vector<1x512xi32>
    %c4_i32 = arith.constant 4 : i32
    %3 = vector.broadcast %c4_i32 : i32 to vector<1x512xi32>
    %4 = arith.shrsi %0, %3 : vector<1x512xi32>
    %c15_i32_0 = arith.constant 15 : i32
    %5 = vector.broadcast %c15_i32_0 : i32 to vector<1x512xi32>
    %6 = arith.andi %4, %5 : vector<1x512xi32>
    %7 = arith.sitofp %2 : vector<1x512xi32> to vector<1x512xf32>
    %cst = arith.constant 0.00999999977 : f32
    %8 = vector.broadcast %cst : f32 to vector<1x512xf32>
    %9 = arith.mulf %7, %8 : vector<1x512xf32>
    %cst_1 = arith.constant -7.500000e-02 : f32
    %10 = vector.broadcast %cst_1 : f32 to vector<1x512xf32>
    %11 = arith.addf %10, %9 : vector<1x512xf32>
    %12 = arith.sitofp %6 : vector<1x512xi32> to vector<1x512xf32>
    %cst_2 = arith.constant 0.00999999977 : f32
    %13 = vector.broadcast %cst_2 : f32 to vector<1x512xf32>
    %14 = arith.mulf %12, %13 : vector<1x512xf32>
    %cst_3 = arith.constant -7.500000e-02 : f32
    %15 = vector.broadcast %cst_3 : f32 to vector<1x512xf32>
    %16 = arith.addf %15, %14 : vector<1x512xf32>
    %c0 = arith.constant 0 : index
    %c0_4 = arith.constant 0 : index
    %17 = vector.load %arg1[%c0, %c0_4] : memref<4x512xf32, #tpu.memory_space<vmem>>, vector<4x512xf32>
    %cst_5 = arith.constant 0.000000e+00 : f32
    %18 = vector.broadcast %cst_5 : f32 to vector<2x512xf32>
    %19 = tpu.concatenate %17, %11, %16, %18 in 0 : vector<4x512xf32>, vector<1x512xf32>, vector<1x512xf32>, vector<2x512xf32> -> vector<8x512xf32>
    %c1_i32 = arith.constant 1 : i32
    %20 = vector.broadcast %c1_i32 : i32 to vector<1x512xi32>
    %21 = arith.cmpi sge, %2, %20 : vector<1x512xi32>
    %c15_i32_6 = arith.constant 15 : i32
    %22 = vector.broadcast %c15_i32_6 : i32 to vector<1x512xi32>
    %23 = arith.cmpi slt, %2, %22 : vector<1x512xi32>
    %c1_i32_7 = arith.constant 1 : i32
    %24 = vector.broadcast %c1_i32_7 : i32 to vector<1x512xi32>
    %25 = arith.cmpi sge, %6, %24 : vector<1x512xi32>
    %c15_i32_8 = arith.constant 15 : i32
    %26 = vector.broadcast %c15_i32_8 : i32 to vector<1x512xi32>
    %27 = arith.cmpi slt, %6, %26 : vector<1x512xi32>
    %28 = arith.andi %25, %21 : vector<1x512xi1>
    %29 = arith.andi %25, %23 : vector<1x512xi1>
    %30 = arith.andi %27, %21 : vector<1x512xi1>
    %31 = arith.andi %27, %23 : vector<1x512xi1>
    %32 = vector.extract_strided_slice %19 {offsets = [0, 495], sizes = [8, 17], strides = [1, 1]} : vector<8x512xf32> to vector<8x17xf32>
    %33 = vector.extract_strided_slice %19 {offsets = [0, 0], sizes = [8, 495], strides = [1, 1]} : vector<8x512xf32> to vector<8x495xf32>
    %34 = tpu.concatenate %32, %33 in 1 : vector<8x17xf32>, vector<8x495xf32> -> vector<8x512xf32>
    %cst_9 = arith.constant 0.000000e+00 : f32
    %35 = vector.shape_cast %28 : vector<1x512xi1> to vector<1x512xi1>
    %36 = vector.broadcast %35 : vector<1x512xi1> to vector<8x512xi1>
    %37 = vector.broadcast %cst_9 : f32 to vector<8x512xf32>
    %38 = arith.select %36, %34, %37 : vector<8x512xi1>, vector<8x512xf32>
    %39 = vector.extract_strided_slice %19 {offsets = [0, 496], sizes = [8, 16], strides = [1, 1]} : vector<8x512xf32> to vector<8x16xf32>
    %40 = vector.extract_strided_slice %19 {offsets = [0, 0], sizes = [8, 496], strides = [1, 1]} : vector<8x512xf32> to vector<8x496xf32>
    %41 = tpu.concatenate %39, %40 in 1 : vector<8x16xf32>, vector<8x496xf32> -> vector<8x512xf32>
    %cst_10 = arith.constant 0.000000e+00 : f32
    %42 = vector.shape_cast %25 : vector<1x512xi1> to vector<1x512xi1>
    %43 = vector.broadcast %42 : vector<1x512xi1> to vector<8x512xi1>
    %44 = vector.broadcast %cst_10 : f32 to vector<8x512xf32>
    %45 = arith.select %43, %41, %44 : vector<8x512xi1>, vector<8x512xf32>
    %46 = vector.extract_strided_slice %19 {offsets = [0, 497], sizes = [8, 15], strides = [1, 1]} : vector<8x512xf32> to vector<8x15xf32>
    %47 = vector.extract_strided_slice %19 {offsets = [0, 0], sizes = [8, 497], strides = [1, 1]} : vector<8x512xf32> to vector<8x497xf32>
    %48 = tpu.concatenate %46, %47 in 1 : vector<8x15xf32>, vector<8x497xf32> -> vector<8x512xf32>
    %cst_11 = arith.constant 0.000000e+00 : f32
    %49 = vector.shape_cast %29 : vector<1x512xi1> to vector<1x512xi1>
    %50 = vector.broadcast %49 : vector<1x512xi1> to vector<8x512xi1>
    %51 = vector.broadcast %cst_11 : f32 to vector<8x512xf32>
    %52 = arith.select %50, %48, %51 : vector<8x512xi1>, vector<8x512xf32>
    %53 = vector.extract_strided_slice %19 {offsets = [0, 511], sizes = [8, 1], strides = [1, 1]} : vector<8x512xf32> to vector<8x1xf32>
    %54 = vector.extract_strided_slice %19 {offsets = [0, 0], sizes = [8, 511], strides = [1, 1]} : vector<8x512xf32> to vector<8x511xf32>
    %55 = tpu.concatenate %53, %54 in 1 : vector<8x1xf32>, vector<8x511xf32> -> vector<8x512xf32>
    %cst_12 = arith.constant 0.000000e+00 : f32
    %56 = vector.shape_cast %21 : vector<1x512xi1> to vector<1x512xi1>
    %57 = vector.broadcast %56 : vector<1x512xi1> to vector<8x512xi1>
    %58 = vector.broadcast %cst_12 : f32 to vector<8x512xf32>
    %59 = arith.select %57, %55, %58 : vector<8x512xi1>, vector<8x512xf32>
    %60 = vector.extract_strided_slice %19 {offsets = [0, 1], sizes = [8, 511], strides = [1, 1]} : vector<8x512xf32> to vector<8x511xf32>
    %61 = vector.extract_strided_slice %19 {offsets = [0, 0], sizes = [8, 1], strides = [1, 1]} : vector<8x512xf32> to vector<8x1xf32>
    %62 = tpu.concatenate %60, %61 in 1 : vector<8x511xf32>, vector<8x1xf32> -> vector<8x512xf32>
    %cst_13 = arith.constant 0.000000e+00 : f32
    %63 = vector.shape_cast %23 : vector<1x512xi1> to vector<1x512xi1>
    %64 = vector.broadcast %63 : vector<1x512xi1> to vector<8x512xi1>
    %65 = vector.broadcast %cst_13 : f32 to vector<8x512xf32>
    %66 = arith.select %64, %62, %65 : vector<8x512xi1>, vector<8x512xf32>
    %67 = vector.extract_strided_slice %19 {offsets = [0, 15], sizes = [8, 497], strides = [1, 1]} : vector<8x512xf32> to vector<8x497xf32>
    %68 = vector.extract_strided_slice %19 {offsets = [0, 0], sizes = [8, 15], strides = [1, 1]} : vector<8x512xf32> to vector<8x15xf32>
    %69 = tpu.concatenate %67, %68 in 1 : vector<8x497xf32>, vector<8x15xf32> -> vector<8x512xf32>
    %cst_14 = arith.constant 0.000000e+00 : f32
    %70 = vector.shape_cast %30 : vector<1x512xi1> to vector<1x512xi1>
    %71 = vector.broadcast %70 : vector<1x512xi1> to vector<8x512xi1>
    %72 = vector.broadcast %cst_14 : f32 to vector<8x512xf32>
    %73 = arith.select %71, %69, %72 : vector<8x512xi1>, vector<8x512xf32>
    %74 = vector.extract_strided_slice %19 {offsets = [0, 16], sizes = [8, 496], strides = [1, 1]} : vector<8x512xf32> to vector<8x496xf32>
    %75 = vector.extract_strided_slice %19 {offsets = [0, 0], sizes = [8, 16], strides = [1, 1]} : vector<8x512xf32> to vector<8x16xf32>
    %76 = tpu.concatenate %74, %75 in 1 : vector<8x496xf32>, vector<8x16xf32> -> vector<8x512xf32>
    %cst_15 = arith.constant 0.000000e+00 : f32
    %77 = vector.shape_cast %27 : vector<1x512xi1> to vector<1x512xi1>
    %78 = vector.broadcast %77 : vector<1x512xi1> to vector<8x512xi1>
    %79 = vector.broadcast %cst_15 : f32 to vector<8x512xf32>
    %80 = arith.select %78, %76, %79 : vector<8x512xi1>, vector<8x512xf32>
    %81 = vector.extract_strided_slice %19 {offsets = [0, 17], sizes = [8, 495], strides = [1, 1]} : vector<8x512xf32> to vector<8x495xf32>
    %82 = vector.extract_strided_slice %19 {offsets = [0, 0], sizes = [8, 17], strides = [1, 1]} : vector<8x512xf32> to vector<8x17xf32>
    %83 = tpu.concatenate %81, %82 in 1 : vector<8x495xf32>, vector<8x17xf32> -> vector<8x512xf32>
    %cst_16 = arith.constant 0.000000e+00 : f32
    %84 = vector.shape_cast %31 : vector<1x512xi1> to vector<1x512xi1>
    %85 = vector.broadcast %84 : vector<1x512xi1> to vector<8x512xi1>
    %86 = vector.broadcast %cst_16 : f32 to vector<8x512xf32>
    %87 = arith.select %85, %83, %86 : vector<8x512xi1>, vector<8x512xf32>
    %cst_17 = arith.constant 1.000000e+00 : f32
    %88 = vector.broadcast %cst_17 : f32 to vector<1x512xf32>
    %cst_18 = arith.constant 0.000000e+00 : f32
    %89 = vector.broadcast %cst_18 : f32 to vector<7x512xf32>
    %90 = tpu.concatenate %88, %89 in 0 : vector<1x512xf32>, vector<7x512xf32> -> vector<8x512xf32>
    %91 = tpu.concatenate %38, %45, %52, %59, %19, %66, %73, %80, %87, %90 in 0 : vector<8x512xf32>, vector<8x512xf32>, vector<8x512xf32>, vector<8x512xf32>, vector<8x512xf32>, vector<8x512xf32>, vector<8x512xf32>, vector<8x512xf32>, vector<8x512xf32>, vector<8x512xf32> -> vector<80x512xf32>
    %c0_19 = arith.constant 0 : index
    %c0_20 = arith.constant 0 : index
    %92 = vector.load %arg2[%c0_19, %c0_20] : memref<8x80xf32, #tpu.memory_space<vmem>>, vector<8x80xf32>
    %cst_21 = arith.constant dense<0.000000e+00> : vector<8x512xf32>
    %93 = tpu.matmul %92, %91, %cst_21 {dimension_numbers = #tpu.dot_dimension_numbers<[1], [0], [0], [1], [0, 0, 1, 1], [], []>} : vector<8x80xf32>, vector<80x512xf32>, vector<8x512xf32> -> vector<8x512xf32>
    %c0_22 = arith.constant 0 : index
    %c0_23 = arith.constant 0 : index
    %94 = vector.load %arg3[%c0_22, %c0_23] : memref<8x512xf32, #tpu.memory_space<vmem>>, vector<8x512xf32>
    tpu.vector_store %arg3[%c0_22, %c0_23], %93 {strides = array<i32>} : memref<8x512xf32, #tpu.memory_space<vmem>>, vector<8x512xf32>,
    return
  }
  func.func @transform_0(%arg0: i32) -> (i32, i32) {
    %c0_i32 = arith.constant 0 : i32
    %c0_i32_0 = arith.constant 0 : i32
    return %c0_i32, %arg0 : i32, i32
  }
  func.func @transform_1(%arg0: i32) -> (i32, i32) {
    %c0_i32 = arith.constant 0 : i32
    %c0_i32_0 = arith.constant 0 : i32
    %c0_i32_1 = arith.constant 0 : i32
    return %c0_i32, %c0_i32_0 : i32, i32
  }
  func.func @transform_2(%arg0: i32) -> (i32, i32) {
    %c0_i32 = arith.constant 0 : i32
    %c0_i32_0 = arith.constant 0 : i32
    return %c0_i32, %arg0 : i32, i32
  }
}

</mosaic_0001>

<bundles_post_ra>
// kernel: coord_conv_forward.1
= control target key start
LH: loop header
LB: loop body
LE: loop exit
PB: predicated region body
PF: predicated region fallthrough
CT: control target
= control target key end

     0   :  { %v11_v0 = vlaneseq  ;;  %vm60_vm0 = vcmask 1043456   ;;  %vm65_vm1 = vcmask 1044480   ;;  %vm910_vm2 = vcmask 1045504   ;;  %s564_s13 = smov 112   ;;  %s565_s14 = smov 113   ;;  %s906_s0 = inlined_call_operand.vmem [shape: f32[4,512], index: 0, kind: input, shape index: {}]   ;;  %s907_s1 = inlined_call_operand.vmem [shape: f32[8,80], index: 1, kind: input, shape index: {}]   ;;  %s908_s2 = inlined_call_operand.vmem [shape: f32[8,512], index: 2, kind: output, shape index: {}]  }
   0x1   :  { %v53_v5 = vld [vmem:[%s906_s0 + $0x8] sm:$0xff]  ;;  %v52_v21 = vld [vmem:[%s906_s0] sm:$0xff]  ;;  %s562_s0 = smov 111   ;;  %vm351_vm3 = vcmask 1040384   ;;  %v563_v54 = vmov 1.0   ;;  %s566_s15 = smov 127  }
   0x2   :  { %v12_v1 = vand.u32 127, %v11_v0  ;;  %v57_v7 = vcombine.high %v53_v5, %v53_v5  ;;  %v56_v38 = vcombine.high %v52_v21, %v52_v21  ;;  %529 = vmatprep.subr.msk.mxu1 %vm351_vm3, %v563_v54  ;;  %508 = vmatprep.subr.msk.mxu0 %vm351_vm3, %v563_v54  ;;  %s567_s16 = smov 1   ;;  %s568_s17 = smov 15  }
   0x3   :  { %530 = vmatpush1.msk.msra.mxu1 %vm351_vm3, %v563_v54  ;;  %509 = vmatpush1.msk.msra.mxu0 %vm351_vm3, %v563_v54  ;;  %s569_s18 = smov 16   ;;  %s571_s19 = smov 17  }
   0x4   :  { %v587_v2 = vand.u32 15, %v12_v1  ;;  %v20_v3 = vshra.s32 %v12_v1, 4  ;;  %v14_v4 = vadd.s32 256, %v12_v1  ;;  %v15_v6 = vadd.s32 384, %v12_v1 }
   0x5   :  { %v13_v8 = vadd.s32 128, %v12_v1 }
   0x6   :  { %v592_v9 = vand.u32 15, %v20_v3  ;;  %v28_v10 = vcvt.s32.f32 %v587_v2  ;;  %v595_v11 = vand.u32 15, %v14_v4  ;;  %v22_v12 = vshra.s32 %v14_v4, 4 }
   0x7   :  { %v597_v13 = vand.u32 15, %v15_v6  ;;  %v23_v14 = vshra.s32 %v15_v6, 4  ;;  %v599_v15 = vand.u32 15, %v13_v8  ;;  %v21_v16 = vshra.s32 %v13_v8, 4 }
   0x8   :  { %v32_v17 = vmul.f32 0.01, %v28_v10  ;;  %v40_v18 = vcvt.s32.f32 %v592_v9  ;;  %v602_v19 = vand.u32 15, %v22_v12  ;;  %v30_v20 = vcvt.s32.f32 %v595_v11 }
   0x9   :  { %v608_v22 = vand.u32 15, %v23_v14  ;;  %v31_v23 = vcvt.s32.f32 %v597_v13  ;;  %v611_v24 = vand.u32 15, %v21_v16  ;;  %v29_v25 = vcvt.s32.f32 %v599_v15 }
   0xa   :  { %v36_v26 = vadd.f32 -0.075, %v32_v17  ;;  %v44_v27 = vmul.f32 0.01, %v40_v18  ;;  %v34_v28 = vmul.f32 0.01, %v30_v20  ;;  %v42_v29 = vcvt.s32.f32 %v602_v19 }
   0xb   :  { %v35_v30 = vmul.f32 0.01, %v31_v23  ;;  %v43_v31 = vcvt.s32.f32 %v608_v22  ;;  %v33_v32 = vmul.f32 0.01, %v29_v25  ;;  %v41_v33 = vcvt.s32.f32 %v611_v24 }
   0xc   :  { %v48_v34 = vadd.f32 -0.075, %v44_v27  ;;  %v61_v35 = vsel %vm60_vm0, %v52_v21, %v36_v26  ;;  %v38_v36 = vadd.f32 -0.075, %v34_v28  ;;  %v46_v37 = vmul.f32 0.01, %v42_v29 }
   0xd   :  { %v39_v39 = vadd.f32 -0.075, %v35_v30  ;;  %v47_v40 = vmul.f32 0.01, %v43_v31  ;;  %v37_v41 = vadd.f32 -0.075, %v33_v32 }
   0xe   :  { %v619_v42 = vsel %vm65_vm1, %v61_v35, %v48_v34  ;;  %v50_v43 = vadd.f32 -0.075, %v46_v37  ;;  %v63_v44 = vsel %vm60_vm0, %v53_v5, %v38_v36  ;;  %v45_v45 = vmul.f32 0.01, %v41_v33 }
   0xf   :  { %v624_v46 = vsel %vm910_vm2, %v619_v42, 0.0  ;;  %v51_v47 = vadd.f32 -0.075, %v47_v40  ;;  %v64_v48 = vsel %vm60_vm0, %v57_v7, %v39_v39  ;;  %v62_v53 = vsel %vm60_vm0, %v56_v38, %v37_v41 }
  0x10   :  { %321 = vrot.lane.b32.xlu0 %v624_v46, %s562_s0  ;;  %v630_v49 = vsel %vm65_vm1, %v63_v44, %v50_v43  ;;  %v49_v50 = vadd.f32 -0.075, %v45_v45  ;;  %vm922_vm4 = vcmp.lt.s32.totalorder %v597_v13, 15  ;;  %vm915_vm5 = vcmp.lt.s32.totalorder %v608_v22, 15 }
  0x11   :  { %v634_v51 = vsel %vm910_vm2, %v630_v49, 0.0  ;;  %v637_v52 = vsel %vm65_vm1, %v64_v48, %v51_v47  ;;  %vm909_vm6 = vcmp.lt.s32.totalorder %v595_v11, 15  ;;  %vm653_vm7 = vmand %vm915_vm5, %vm922_vm4  ;;  %vm914_vm8 = vcmp.lt.s32.totalorder %v602_v19, 15 }
  0x12   :  { %325 = vrot.lane.b32.xlu1 %v634_v51, %s562_s0  ;;  %v647_v55 = vsel %vm910_vm2, %v637_v52, 0.0  ;;  %vm919_vm9 = vcmp.lt.s32.totalorder %v599_v15, 15  ;;  %v661_v57 = vsel %vm65_vm1, %v62_v53, %v49_v50  ;;  %vm667_vm10 = vmand %vm914_vm8, %vm909_vm6  ;;  %vm911_vm11 = vcmp.lt.s32.totalorder %v611_v24, 15 }
  0x13   :  { %vm921_vm12 = vcmp.lt.s32.totalorder %v587_v2, 15  ;;  %vm913_vm13 = vcmp.lt.s32.totalorder %v592_v9, 15  ;;  %vm678_vm14 = vmand %vm911_vm11, %vm919_vm9  ;;  %vm912_vm0 = vcmp.ge.s32.totalorder %v599_v15, 1  ;;  %v72_v61 = vsel %vm910_vm2, %v661_v57, 0.0 }
  0x14   :  { %291 = vrot.lane.b32.xlu0 %v624_v46, %s564_s13  ;;  %vm688_vm15 = vmand %vm913_vm13, %vm921_vm12  ;;  %vm918_vm3 = vcmp.ge.s32.totalorder %v587_v2, 1  ;;  %vm917_vm2 = vcmp.ge.s32.totalorder %v597_v13, 1  ;;  %v942_v3 = vmov 0  ;;  %v946_v5 = vmov 0 }
  0x15   :  { %vm699_vm1 = vmand %vm911_vm11, %vm912_vm0  ;;  %vm916_vm0 = vcmp.ge.s32.totalorder %v595_v11, 1  ;;  %v949_v6 = vmov 0  ;;  %v953_v7 = vmov 0  ;;  %v570_v10 = vmov 0.0  }
  0x16   :  { %327 = vrot.lane.b32.xlu1 %v647_v55, %s562_s0  ;;  %vm709_vm6 = vmand %vm913_vm13, %vm918_vm3  ;;  %vm923_vm3 = vcmp.ge.s32.totalorder %v608_v22, 1  ;;  %422 = vmatprep.mubr.f32.mxu0 %v570_v10 }
  0x17   :  { %vm718_vm11 = vmand %vm915_vm5, %vm917_vm2  ;;  %493 = vmatprep.mubr.f32.mxu1 %v570_v10 }
  0x18   :  { %261 = vrot.lane.b32.xlu0 %v624_v46, %s565_s14  ;;  %vm727_vm13 = vmand %vm914_vm8, %vm916_vm0  ;;  %vm920_vm8 = vcmp.ge.s32.totalorder %v611_v24, 1  ;;  %vm924_vm0 = vcmp.ge.s32.totalorder %v592_v9, 1 }
  0x19   :  { %vm744_vm5 = vmand %vm920_vm8, %vm919_vm9  ;;  %vm925_vm8 = vcmp.ge.s32.totalorder %v602_v19, 1 }
  0x1a   :  { %293 = vrot.lane.b32.xlu1 %v72_v61, %s564_s13  ;;  %v943_v3 = vsel %vm744_vm5, 4294967295, %v942_v3  ;;  %vm754_vm2 = vmand %vm924_vm0, %vm921_vm12  ;;  %vm948_vm5 = vcmp.lt.s32.totalorder %v595_v11, 15 }
  0x1b   :  { %vm763_vm9 = vmand %vm923_vm3, %vm922_vm4  ;;  %vm951_vm4 = vcmp.ge.s32.totalorder %v599_v15, 1  ;;  %vm952_vm3 = vcmp.ge.s32.totalorder %v611_v24, 1 }
  0x1c   :  { %323 = vrot.lane.b32.xlu0 %v72_v61, %s562_s0  ;;  %v947_v5 = vsel %vm763_vm9, 4294967295, %v946_v5  ;;  %vm773_vm12 = vmand %vm925_vm8, %vm948_vm5  ;;  %vm955_vm5 = vcmp.ge.s32.totalorder %v587_v2, 1  ;;  %vm956_vm8 = vcmp.ge.s32.totalorder %v592_v9, 1  ;;  %vm959_vm9 = vcmp.ge.s32.totalorder %v597_v13, 1 }
  0x1d   :  { %v950_v6 = vsel %vm773_vm12, 4294967295, %v949_v6  ;;  %vm785_vm0 = vmand %vm952_vm3, %vm951_vm4  ;;  %vm960_vm4 = vcmp.ge.s32.totalorder %v608_v22, 1 }
  0x1e   :  { %297 = vrot.lane.b32.xlu1 %v647_v55, %s564_s13  ;;  %v954_v7 = vsel %vm785_vm0, 4294967295, %v953_v7  ;;  %vm794_vm12 = vmand %vm956_vm8, %vm955_vm5  ;;  %vm963_vm0 = vcmp.ge.s32.totalorder %v595_v11, 1  ;;  %vm964_vm8 = vcmp.ge.s32.totalorder %v602_v19, 1 }
  0x1f   :  { %vm802_vm3 = vmand %vm960_vm4, %vm959_vm9  ;;  %vm329_vm9 = vcmask 908288   ;;  %vm967_vm4 = vcmp.lt.s32.totalorder %v608_v22, 15 }
  0x20   :  { %295 = vrot.lane.b32.xlu0 %v634_v51, %s564_s13  ;;  %vm811_vm5 = vmand %vm964_vm8, %vm963_vm0  ;;  %vm299_vm0 = vcmask 916480   ;;  %vm269_vm8 = vcmask 924672  }
  0x22   :  { %263 = vrot.lane.b32.xlu1 %v72_v61, %s565_s14 }
  0x24   :  { %265 = vrot.lane.b32.xlu0 %v634_v51, %s565_s14 }
  0x26   :  { %267 = vrot.lane.b32.xlu1 %v647_v55, %s565_s14 }
  0x28   :  { %231 = vrot.lane.b32.xlu0 %v624_v46, %s566_s15 }
  0x2a   :  { %233 = vrot.lane.b32.xlu1 %v72_v61, %s566_s15 }
  0x2c   :  { %235 = vrot.lane.b32.xlu0 %v634_v51, %s566_s15 }
  0x2e   :  { %237 = vrot.lane.b32.xlu1 %v647_v55, %s566_s15 }
  0x30   :  { %201 = vrot.lane.b32.xlu0 %v647_v55, %s567_s16 }
  0x32   :  { %204 = vrot.lane.b32.xlu1 %v624_v46, %s567_s16 }
  0x34   :  { %206 = vrot.lane.b32.xlu0 %v72_v61, %s567_s16 }
  0x36   :  { %208 = vrot.lane.b32.xlu1 %v634_v51, %s567_s16 }
  0x38   :  { %171 = vrot.lane.b32.xlu0 %v647_v55, %s568_s17 }
  0x3a   :  { %174 = vrot.lane.b32.xlu1 %v624_v46, %s568_s17 }
  0x3c   :  { %176 = vrot.lane.b32.xlu0 %v72_v61, %s568_s17 }
  0x3e   :  { %178 = vrot.lane.b32.xlu1 %v634_v51, %s568_s17 }
  0x40   :  { %141 = vrot.lane.b32.xlu0 %v647_v55, %s569_s18 }
  0x42   :  { %144 = vrot.lane.b32.xlu1 %v624_v46, %s569_s18 }
  0x44   :  { %146 = vrot.lane.b32.xlu0 %v72_v61, %s569_s18 }
  0x46   :  { %148 = vrot.lane.b32.xlu1 %v634_v51, %s569_s18 }
  0x48   :  { %108 = vrot.lane.b32.xlu0 %v647_v55, %s571_s19 }
  0x4a   :  { %114 = vrot.lane.b32.xlu1 %v624_v46, %s571_s19 }
  0x4c   :  { %116 = vrot.lane.b32.xlu0 %v72_v61, %s571_s19 }
  0x4e   :  { %118 = vrot.lane.b32.xlu1 %v634_v51, %s571_s19 }
  0x82   :  { %v322_v16 = vpop.permute.xlu0 %321 }
  0x84   :  { %v326_v17 = vpop.permute.xlu1 %325 }
  0x86   :  { %v292_v18 = vpop.permute.xlu0 %291 }
  0x88   :  { %v328_v20 = vpop.permute.xlu1 %327 }
  0x89   :  { %v332_v21 = vsel %vm329_vm9, %v326_v17, %v328_v20  ;;  %v338_v23 = vsel %vm329_vm9, %v328_v20, %v322_v16 }
  0x8a   :  { %531 = vmatprep.subr.msk.mxu1 %vm653_vm7, %v338_v23  ;;  %v262_v25 = vpop.permute.xlu0 %261  ;;  %vm968_vm7 = vcmp.lt.s32.totalorder %v611_v24, 15 }
  0x8b   :  { %532 = vmatpush1.msk.msra.mxu1 %vm667_vm10, %v332_v21  ;;  %vm969_vm10 = vcmp.lt.s32.totalorder %v602_v19, 15 }
  0x8c   :  { %v294_v26 = vpop.permute.xlu1 %293 }
  0x8d   :  { %v300_v35 = vsel %vm299_vm0, %v292_v18, %v294_v26 }
  0x8e   :  { %v324_v27 = vpop.permute.xlu0 %323 }
  0x8f   :  { %v330_v28 = vsel %vm329_vm9, %v322_v16, %v324_v27  ;;  %v331_v29 = vsel %vm329_vm9, %v324_v27, %v326_v17  ;;  %vm975_vm9 = vcmp.lt.s32.totalorder %v595_v11, 15 }
  0x90   :  { %v298_v30 = vpop.permute.xlu1 %297  ;;  %510 = vmatprep.subr.msk.mxu0 %vm678_vm14, %v331_v29  ;;  %vm970_vm14 = vcmp.lt.s32.totalorder %v592_v9, 15 }
  0x91   :  { %v308_v31 = vsel %vm299_vm0, %v298_v30, %v292_v18  ;;  %511 = vmatpush1.msk.msra.mxu0 %vm688_vm15, %v330_v28  ;;  %vm239_vm15 = vcmask 1039360  }
  0x92   :  { %533 = vmatprep.subr.msk.mxu1 %vm967_vm4, %v308_v31  ;;  %v296_v32 = vpop.permute.xlu0 %295 }
  0x93   :  { %v301_v33 = vsel %vm299_vm0, %v294_v26, %v296_v32  ;;  %v302_v34 = vsel %vm299_vm0, %v296_v32, %v298_v30 }
  0x94   :  { %v264_v36 = vpop.permute.xlu1 %263  ;;  %512 = vmatprep.subr.msk.mxu0 %vm968_vm7, %v301_v33  ;;  %534 = vmatpush1.msk.msra.mxu1 %vm969_vm10, %v302_v34  ;;  %vm210_vm7 = vcmask 7168  }
  0x95   :  { %513 = vmatpush1.msk.msra.mxu0 %vm970_vm14, %v300_v35  ;;  %v270_v39 = vsel %vm269_vm8, %v262_v25, %v264_v36  ;;  %vm980_vm14 = vcmp.ge.s32.totalorder %v587_v2, 1 }
  0x96   :  { %v266_v37 = vpop.permute.xlu0 %265 }
  0x97   :  { %v271_v38 = vsel %vm269_vm8, %v264_v36, %v266_v37 }
  0x98   :  { %v268_v40 = vpop.permute.xlu1 %267  ;;  %514 = vmatprep.subr.msk.mxu0 %vm699_vm1, %v271_v38  ;;  %vm971_vm1 = vcmp.lt.s32.totalorder %v599_v15, 15 }
  0x99   :  { %v272_v41 = vsel %vm269_vm8, %v266_v37, %v268_v40  ;;  %v278_v43 = vsel %vm269_vm8, %v268_v40, %v262_v25  ;;  %515 = vmatpush1.msk.msra.mxu0 %vm709_vm6, %v270_v39  ;;  %vm972_vm6 = vcmp.lt.s32.totalorder %v587_v2, 15  ;;  %vm979_vm8 = vcmp.ge.s32.totalorder %v599_v15, 1 }
  0x9a   :  { %535 = vmatprep.subr.msk.mxu1 %vm718_vm11, %v278_v43  ;;  %v232_v44 = vpop.permute.xlu0 %231  ;;  %vm973_vm11 = vcmp.lt.s32.totalorder %v597_v13, 15 }
  0x9b   :  { %536 = vmatpush1.msk.msra.mxu1 %vm727_vm13, %v272_v41  ;;  %vm974_vm13 = vcmask 1045504  }
  0x9c   :  { %v234_v45 = vpop.permute.xlu1 %233  ;;  %vm976_vm0 = vmmov %vm974_vm13 }
  0x9d   :  { %v240_v48 = vsel %vm239_vm15, %v232_v44, %v234_v45  ;;  %vm977_vm4 = vmmov %vm976_vm0 }
  0x9e   :  { %v236_v46 = vpop.permute.xlu0 %235  ;;  %vm978_vm10 = vmmov %vm976_vm0 }
  0x9f   :  { %v241_v47 = vsel %vm239_vm15, %v234_v45, %v236_v46 }
  0xa0   :  { %v238_v50 = vpop.permute.xlu1 %237  ;;  %516 = vmatprep.subr.msk.mxu0 %vm971_vm1, %v241_v47  ;;  %vm982_vm1 = vcmp.ge.s32.totalorder %v595_v11, 1 }
  0xa1   :  { %v242_v51 = vsel %vm239_vm15, %v236_v46, %v238_v50  ;;  %v248_v53 = vsel %vm239_vm15, %v238_v50, %v232_v44  ;;  %517 = vmatpush1.msk.msra.mxu0 %vm972_vm6, %v240_v48  ;;  %vm981_vm15 = vcmp.ge.s32.totalorder %v597_v13, 1  ;;  %vm180_vm6 = vcmask 121856  }
  0xa2   :  { %537 = vmatprep.subr.msk.mxu1 %vm973_vm11, %v248_v53  ;;  %v202_v54 = vpop.permute.xlu0 %201  ;;  %518 = vmatprep.subr.msk.mxu0 %vm974_vm13, %v661_v57  ;;  %vm983_vm11 = vnez %v943_v3  ;;  %vm984_vm13 = vnez %v947_v5 }
  0xa3   :  { %538 = vmatpush1.msk.msra.mxu1 %vm975_vm9, %v242_v51  ;;  %519 = vmatpush1.msk.msra.mxu0 %vm976_vm0, %v619_v42  ;;  %vm985_vm9 = vnez %v950_v6  ;;  %vm150_vm0 = vcmask 130048  }
  0xa4   :  { %v205_v55 = vpop.permute.xlu1 %204  ;;  %539 = vmatprep.subr.msk.mxu1 %vm977_vm4, %v637_v52  ;;  %vm986_vm4 = vcmp.ge.s32.totalorder %v611_v24, 1  ;;  %v353_v24 = vld [vmem:[%s907_s1] sm:$0xff] }
  0xa5   :  { %540 = vmatpush1.msk.msra.mxu1 %vm978_vm10, %v630_v49  ;;  %v218_v59 = vsel %vm210_vm7, %v202_v54, %v205_v55  ;;  %vm989_vm10 = vcmp.ge.s32.totalorder %v602_v19, 1 }
  0xa6   :  { %v207_v56 = vpop.permute.xlu0 %206 }
  0xa7   :  { %v211_v58 = vsel %vm210_vm7, %v205_v55, %v207_v56 }
  0xa8   :  { %v209_v60 = vpop.permute.xlu1 %208  ;;  %520 = vmatprep.subr.msk.mxu0 %vm979_vm8, %v211_v58  ;;  %vm120_vm8 = vcmask 138240  }
  0xa9   :  { %v212_v57 = vsel %vm210_vm7, %v207_v56, %v209_v60  ;;  %v213_v61 = vsel %vm210_vm7, %v209_v60, %v202_v54  ;;  %521 = vmatpush1.msk.msra.mxu0 %vm980_vm14, %v218_v59  ;;  %vm988_vm7 = vcmp.ge.s32.totalorder %v608_v22, 1  ;;  %vm354_vm14 = vcmask 654336  }
  0xaa   :  { %541 = vmatprep.subr.msk.mxu1 %vm981_vm15, %v213_v61  ;;  %v172_v42 = vpop.permute.xlu0 %171  ;;  %vm990_vm15 = vnez %v954_v7 }
  0xab   :  { %542 = vmatpush1.msk.msra.mxu1 %vm982_vm1, %v212_v57 }
  0xac   :  { %v175_v49 = vpop.permute.xlu1 %174 }
  0xad   :  { %v188_v63 = vsel %vm180_vm6, %v172_v42, %v175_v49 }
  0xae   :  { %v177_v52 = vpop.permute.xlu0 %176 }
  0xaf   :  { %v181_v62 = vsel %vm180_vm6, %v175_v49, %v177_v52 }
  0xb0   :  { %v179_v0 = vpop.permute.xlu1 %178  ;;  %522 = vmatprep.subr.msk.mxu0 %vm983_vm11, %v181_v62 }
  0xb1   :  { %v182_v15 = vsel %vm180_vm6, %v177_v52, %v179_v0  ;;  %v183_v1 = vsel %vm180_vm6, %v179_v0, %v172_v42  ;;  %523 = vmatpush1.msk.msra.mxu0 %vm754_vm2, %v188_v63  ;;  %vm987_vm2 = vcmp.ge.s32.totalorder %v592_v9, 1 }
  0xb2   :  { %543 = vmatprep.subr.msk.mxu1 %vm984_vm13, %v183_v1  ;;  %v142_v2 = vpop.permute.xlu0 %141 }
  0xb3   :  { %544 = vmatpush1.msk.msra.mxu1 %vm985_vm9, %v182_v15 }
  0xb4   :  { %v145_v11 = vpop.permute.xlu1 %144 }
  0xb5   :  { %v158_v16 = vsel %vm150_vm0, %v142_v2, %v145_v11 }
  0xb6   :  { %v147_v13 = vpop.permute.xlu0 %146 }
  0xb7   :  { %v151_v10 = vsel %vm150_vm0, %v145_v11, %v147_v13 }
  0xb8   :  { %v149_v17 = vpop.permute.xlu1 %148  ;;  %524 = vmatprep.subr.msk.mxu0 %vm986_vm4, %v151_v10 }
  0xb9   :  { %v152_v3 = vsel %vm150_vm0, %v147_v13, %v149_v17  ;;  %v153_v18 = vsel %vm150_vm0, %v149_v17, %v142_v2  ;;  %525 = vmatpush1.msk.msra.mxu0 %vm987_vm2, %v158_v16 }
  0xba   :  { %545 = vmatprep.subr.msk.mxu1 %vm988_vm7, %v153_v18  ;;  %v109_v4 = vpop.permute.xlu0 %108 }
  0xbb   :  { %546 = vmatpush1.msk.msra.mxu1 %vm989_vm10, %v152_v3 }
  0xbc   :  { %v115_v5 = vpop.permute.xlu1 %114 }
  0xbd   :  { %v128_v21 = vsel %vm120_vm8, %v109_v4, %v115_v5 }
  0xbe   :  { %v117_v6 = vpop.permute.xlu0 %116 }
  0xbf   :  { %v121_v20 = vsel %vm120_vm8, %v115_v5, %v117_v6 }
  0xc0   :  { %v119_v23 = vpop.permute.xlu1 %118  ;;  %526 = vmatprep.subr.msk.mxu0 %vm990_vm15, %v121_v20 }
  0xc1   :  { %v122_v9 = vsel %vm120_vm8, %v117_v6, %v119_v23  ;;  %v123_v22 = vsel %vm120_vm8, %v119_v23, %v109_v4  ;;  %527 = vmatpush1.msk.msra.mxu0 %vm794_vm12, %v128_v21 }
  0xc2   :  { %528 = vmatmul.mubr.msk.f32.vlgmr.msra.gmra.mxu0 %vm354_vm14, %v353_v24  ;;  %547 = vmatprep.subr.msk.mxu1 %vm802_vm3, %v123_v22 }
  0xc3   :  { %548 = vmatpush1.msk.msra.mxu1 %vm811_vm5, %v122_v9 }
  0xc4   :  { %549 = vmatmul.mubr.msk.f32.vlgmr.msra.gmra.mxu1 %vm354_vm14, %v353_v24 }
 0x182   :  { %v424_v19 = vpop.f32.mrf.mxu0 }
 0x183   :  { %500 = vst [vmem:[%s908_s2] sm:$0xff] %v424_v19 }
 0x184   :  { %v426_v7 = vpop.f32.mrf.mxu0  ;;  %v495_v25 = vpop.f32.mrf.mxu1 }
 0x185   :  { %501 = vst [vmem:[%s908_s2 + $0x8] sm:$0xff] %v426_v7  ;;  %502 = vst [vmem:[%s908_s2 + $0x10] sm:$0xff] %v495_v25 }
 0x186   :  { %v497_v8 = vpop.f32.mrf.mxu1 }
 0x187   :  { %503 = vst [vmem:[%s908_s2 + $0x18] sm:$0xff] %v497_v8 }

</bundles_post_ra>
